<compile_context>
chip_gen: v7x
topology: tpu7x:2x2x1
jax: 0.10.0
libtpu: 0.0.40
codegen_flags: <defaults>
</compile_context>

<pallas_src>
import functools

import jax
import jax.numpy as jnp
from jax.experimental import pallas as pl
from jax.experimental.pallas import tpu as pltpu


def _quantize_kernel(K, probs_ref, u_ref, tri_ref, strict_ref, ones_ref,
                     expand_ref, wbd_ref, out_ref):
    """One row-tile of categorical sampling + embedding lookup (packed layout).

    probs_ref  : (TM, 128)  - P=128//K logical rows of K classes packed per vector row
    u_ref      : (TM, P)    - one uniform in [0,1) per logical row
    tri_ref    : (128, 128) - block-diag of upper-triangular(K)  -> inclusive cumsum
    strict_ref : (128, 128) - block-diag of strictly-upper tri   -> exclusive cumsum
    ones_ref   : (128, 128) - block-diag of ones(K,K)            -> per-row total
    expand_ref : (P, 128)   - block-diag of ones(1,K)            -> broadcast u to lanes
    wbd_ref    : (128, 128) - block-diag of embedding table W (f32, pre-cast)
    out_ref    : (TM, 128)  - gathered embeddings, packed layout
    """
    p = probs_ref[...].astype(jnp.float32)                               # (TM, 128)
    u = u_ref[...]                                                       # (TM, P) f32

    # Segmented (per logical row) cumulative sums / totals via block-diag MXU matmuls.
    c_incl = jnp.dot(p, tri_ref[...], preferred_element_type=jnp.float32)
    c_excl = jnp.dot(p, strict_ref[...], preferred_element_type=jnp.float32)
    total = jnp.dot(p, ones_ref[...], preferred_element_type=jnp.float32)

    # Broadcast each row's uniform across its K-lane class block; Categorical
    # normalizes, so the threshold is u * sum(p).
    thresh = jnp.dot(u, expand_ref[...], preferred_element_type=jnp.float32) * total

    # Inverse-CDF: fire at the first class with inclusive-cdf > thresh and
    # exclusive-cdf <= thresh.  Edge guard: thresh <= total == c_incl[last lane],
    # so using >= on the last class of each block guarantees exactly one fire.
    lane = jax.lax.broadcasted_iota(jnp.int32, p.shape, 1)
    is_last = (lane % K) == (K - 1)
    hit = (c_incl > thresh) | (is_last & (c_incl >= thresh))
    onehot = (hit & (c_excl <= thresh)).astype(jnp.float32)              # (TM, 128)

    # Embedding lookup: one-hot @ block-diag(W) keeps the packed layout.
    emb = jnp.dot(onehot, wbd_ref[...], preferred_element_type=jnp.float32)
    out_ref[...] = emb.astype(out_ref.dtype)


@functools.partial(jax.jit, static_argnames=("block_rows",))
def quantize(probs, embed_w, u, *, block_rows=512):
    """probs: [..., K]; embed_w: (K, K); u: (N,) or (N,1) uniforms, N = probs.size // K.

    block_rows = packed-row tile (each packed row holds 128//K logical rows).
    """
    K = embed_w.shape[0]
    # TODO(synk): K must divide 128 for the lane-packing path; other K would need a
    #             different packing (or the plain (N, K) layout).
    assert 128 % K == 0, "class count must divide 128 for lane packing"
    assert block_rows % 8 == 0
    P = 128 // K
    LANES = P * K  # 128

    orig_shape = probs.shape
    out_dtype = probs.dtype
    p2 = probs.reshape(-1, K)                 # row-major, matches torch reshape(-1, K)
    n = p2.shape[0]
    u_flat = u.reshape(-1)
    assert u_flat.shape[0] == n, "u must have one uniform per flattened row of probs"

    # ---- pack + pad rows to a whole number of tiles -------------------------------
    n_packed = -(-n // P)
    tm = min(block_rows, ((n_packed + 7) // 8) * 8)       # tile in packed rows (mult of 8)
    n_packed_pad = -(-n_packed // tm) * tm
    n_rows_pad = n_packed_pad * P
    pad = n_rows_pad - n
    if pad:
        p2 = jnp.concatenate([p2, jnp.ones((pad, K), p2.dtype)], axis=0)
        u_flat = jnp.concatenate(
            [u_flat, jnp.full((pad,), 0.5, u_flat.dtype)], axis=0)
    p_packed = p2.reshape(n_packed_pad, LANES)
    u_packed = u_flat.reshape(n_packed_pad, P).astype(jnp.float32)

    # ---- resident block-diagonal constants (cast W to f32 once, outside kernel) ---
    eye_p = jnp.eye(P, dtype=jnp.float32)
    r = jnp.arange(K)
    tri_bd = jnp.kron(eye_p, (r[:, None] <= r[None, :]).astype(jnp.float32))
    strict_bd = jnp.kron(eye_p, (r[:, None] < r[None, :]).astype(jnp.float32))
    ones_bd = jnp.kron(eye_p, jnp.ones((K, K), jnp.float32))
    expand = jnp.kron(eye_p, jnp.ones((1, K), jnp.float32))            # (P, 128)
    w_bd = jnp.kron(eye_p, embed_w.astype(jnp.float32))

    grid = (n_packed_pad // tm,)
    emb_packed = pl.pallas_call(
        functools.partial(_quantize_kernel, K),
        out_shape=jax.ShapeDtypeStruct((n_packed_pad, LANES), out_dtype),
        grid_spec=pltpu.PrefetchScalarGridSpec(
            num_scalar_prefetch=0,
            grid=grid,
            in_specs=[
                pl.BlockSpec((tm, LANES), lambda i: (i, 0)),       # packed probs
                pl.BlockSpec((tm, P), lambda i: (i, 0)),           # packed uniforms
                pl.BlockSpec((LANES, LANES), lambda i: (0, 0)),    # tri (resident)
                pl.BlockSpec((LANES, LANES), lambda i: (0, 0)),    # strict tri (resident)
                pl.BlockSpec((LANES, LANES), lambda i: (0, 0)),    # ones (resident)
                pl.BlockSpec((P, LANES), lambda i: (0, 0)),        # u expander (resident)
                pl.BlockSpec((LANES, LANES), lambda i: (0, 0)),    # block-diag W (resident)
            ],
            out_specs=pl.BlockSpec((tm, LANES), lambda i: (i, 0)),  # lane-dense output
        ),
        compiler_params=pltpu.CompilerParams(
            dimension_semantics=("parallel",)),
    )(p_packed, u_packed, tri_bd, strict_bd, ones_bd, expand, w_bd)

    emb = emb_packed.reshape(-1, K)[:n].reshape(orig_shape)
    # Straight-through estimator (gradient plumbing; numerically ~adds zero).
    return emb + probs - jax.lax.stop_gradient(probs)


if __name__ == "__main__":
    key = jax.random.PRNGKey(0)
    k_logits, k_embed, k_u = jax.random.split(key, 3)

    # latent_shape = (16, 9): 9 categorical latents with 16 classes each; batch = 4.
    # (odd latent count exercises the row padding / tail masking path)
    K = 16
    B, L = 4, 9
    probs = jax.nn.softmax(
        jax.random.normal(k_logits, (B, L, K), dtype=jnp.float32), axis=-1)

    # nn.Embedding(K, K) init ~ N(0, 1), deterministic here.
    embed_w = jax.random.normal(k_embed, (K, K), dtype=jnp.float32)
    # onehot=True mode would instead use: embed_w = jnp.eye(K, dtype=jnp.float32)

    N = B * L
    u = jax.random.uniform(k_u, (N,), dtype=jnp.float32)

    out = quantize(probs, embed_w, u)
    out = jax.block_until_ready(out)

    # Pure-JAX reference (same inverse-CDF convention) for a sanity check.
    p2 = probs.reshape(-1, K)
    c = jnp.cumsum(p2, axis=-1)
    thresh = u[:, None] * jnp.sum(p2, axis=-1, keepdims=True)
    idx = jnp.minimum(jnp.sum((c <= thresh).astype(jnp.int32), axis=-1), K - 1)
    ref = embed_w[idx].reshape(probs.shape) + probs - jax.lax.stop_gradient(probs)

    assert out.shape == probs.shape and out.dtype == probs.dtype
    assert jnp.allclose(out, ref, atol=1e-5), "mismatch vs reference"
    print("KERNEL_OK")
</pallas_src>

<mosaic_0001>
module attributes {stable_mosaic.version = 11 : i64} {
  func.func @_quantize_kernel(%arg0: i32, %arg1: memref<8x128xf32, #tpu.memory_space<vmem>>, %arg2: memref<8x8xf32, #tpu.memory_space<vmem>>, %arg3: memref<128x128xf32, #tpu.memory_space<vmem>>, %arg4: memref<128x128xf32, #tpu.memory_space<vmem>>, %arg5: memref<128x128xf32, #tpu.memory_space<vmem>>, %arg6: memref<8x128xf32, #tpu.memory_space<vmem>>, %arg7: memref<128x128xf32, #tpu.memory_space<vmem>>, %arg8: memref<8x128xf32, #tpu.memory_space<vmem>>) attributes {dimension_semantics = [#tpu.dimension_semantics<parallel>], iteration_bounds = array<i64: 1>, scalar_prefetch = 0 : i64, scratch_operands = 0 : i64, tpu.core_type = #tpu.core_type<tc>, window_params = [{transform_indices = @transform_0, window_bounds = array<i64: 8, 128>}, {transform_indices = @transform_1, window_bounds = array<i64: 8, 8>}, {pipeline_mode = #tpu.pipeline_mode<synchronous>, transform_indices = @transform_2, window_bounds = array<i64: 128, 128>}, {pipeline_mode = #tpu.pipeline_mode<synchronous>, transform_indices = @transform_3, window_bounds = array<i64: 128, 128>}, {pipeline_mode = #tpu.pipeline_mode<synchronous>, transform_indices = @transform_4, window_bounds = array<i64: 128, 128>}, {pipeline_mode = #tpu.pipeline_mode<synchronous>, transform_indices = @transform_5, window_bounds = array<i64: 8, 128>}, {pipeline_mode = #tpu.pipeline_mode<synchronous>, transform_indices = @transform_6, window_bounds = array<i64: 128, 128>}, {transform_indices = @transform_7, window_bounds = array<i64: 8, 128>}]} {
    %c0 = arith.constant 0 : index
    %c0_0 = arith.constant 0 : index
    %0 = vector.load %arg1[%c0, %c0_0] : memref<8x128xf32, #tpu.memory_space<vmem>>, vector<8x128xf32>
    %c0_1 = arith.constant 0 : index
    %c0_2 = arith.constant 0 : index
    %1 = vector.load %arg2[%c0_1, %c0_2] : memref<8x8xf32, #tpu.memory_space<vmem>>, vector<8x8xf32>
    %c0_3 = arith.constant 0 : index
    %c0_4 = arith.constant 0 : index
    %2 = vector.load %arg3[%c0_3, %c0_4] : memref<128x128xf32, #tpu.memory_space<vmem>>, vector<128x128xf32>
    %cst = arith.constant dense<0.000000e+00> : vector<8x128xf32>
    %3 = tpu.matmul %0, %2, %cst {dimension_numbers = #tpu.dot_dimension_numbers<[1], [0], [0], [1], [0, 0, 1, 1], [], []>} : vector<8x128xf32>, vector<128x128xf32>, vector<8x128xf32> -> vector<8x128xf32>
    %c0_5 = arith.constant 0 : index
    %c0_6 = arith.constant 0 : index
    %4 = vector.load %arg4[%c0_5, %c0_6] : memref<128x128xf32, #tpu.memory_space<vmem>>, vector<128x128xf32>
    %cst_7 = arith.constant dense<0.000000e+00> : vector<8x128xf32>
    %5 = tpu.matmul %0, %4, %cst_7 {dimension_numbers = #tpu.dot_dimension_numbers<[1], [0], [0], [1], [0, 0, 1, 1], [], []>} : vector<8x128xf32>, vector<128x128xf32>, vector<8x128xf32> -> vector<8x128xf32>
    %c0_8 = arith.constant 0 : index
    %c0_9 = arith.constant 0 : index
    %6 = vector.load %arg5[%c0_8, %c0_9] : memref<128x128xf32, #tpu.memory_space<vmem>>, vector<128x128xf32>
    %cst_10 = arith.constant dense<0.000000e+00> : vector<8x128xf32>
    %7 = tpu.matmul %0, %6, %cst_10 {dimension_numbers = #tpu.dot_dimension_numbers<[1], [0], [0], [1], [0, 0, 1, 1], [], []>} : vector<8x128xf32>, vector<128x128xf32>, vector<8x128xf32> -> vector<8x128xf32>
    %c0_11 = arith.constant 0 : index
    %c0_12 = arith.constant 0 : index
    %8 = vector.load %arg6[%c0_11, %c0_12] : memref<8x128xf32, #tpu.memory_space<vmem>>, vector<8x128xf32>
    %cst_13 = arith.constant dense<0.000000e+00> : vector<8x128xf32>
    %9 = tpu.matmul %1, %8, %cst_13 {dimension_numbers = #tpu.dot_dimension_numbers<[1], [0], [0], [1], [0, 0, 1, 1], [], []>} : vector<8x8xf32>, vector<8x128xf32>, vector<8x128xf32> -> vector<8x128xf32>
    %10 = arith.mulf %9, %7 : vector<8x128xf32>
    %11 = tpu.iota {dimensions = array<i32: 1>} : vector<8x128xi32>
    %c16_i32 = arith.constant 16 : i32
    %c0_i32 = arith.constant 0 : i32
    %12 = arith.cmpi eq, %c16_i32, %c0_i32 : i32
    %c1_i32 = arith.constant 1 : i32
    %13 = arith.select %12, %c1_i32, %c16_i32 : i32
    %14 = vector.broadcast %13 : i32 to vector<8x128xi32>
    %15 = arith.remsi %11, %14 : vector<8x128xi32>
    %c0_i32_14 = arith.constant 0 : i32
    %16 = vector.broadcast %c0_i32_14 : i32 to vector<8x128xi32>
    %17 = arith.cmpi ne, %15, %16 : vector<8x128xi32>
    %c0_i32_15 = arith.constant 0 : i32
    %18 = vector.broadcast %c0_i32_15 : i32 to vector<8x128xi32>
    %19 = arith.cmpi slt, %15, %18 : vector<8x128xi32>
    %c0_i32_16 = arith.constant 0 : i32
    %20 = arith.cmpi slt, %13, %c0_i32_16 : i32
    %21 = vector.broadcast %20 : i1 to vector<8x128xi1>
    %22 = vector.broadcast %21 : vector<8x128xi1> to vector<8x128xi1>
    %23 = arith.xori %19, %22 : vector<8x128xi1>
    %24 = arith.andi %23, %17 : vector<8x128xi1>
    %25 = vector.broadcast %13 : i32 to vector<8x128xi32>
    %26 = arith.addi %15, %25 : vector<8x128xi32>
    %27 = arith.select %24, %26, %15 : vector<8x128xi1>, vector<8x128xi32>
    %c15_i32 = arith.constant 15 : i32
    %28 = vector.broadcast %c15_i32 : i32 to vector<8x128xi32>
    %29 = arith.cmpi eq, %27, %28 : vector<8x128xi32>
    %30 = arith.cmpf ogt, %3, %10 : vector<8x128xf32>
    %31 = arith.cmpf oge, %3, %10 : vector<8x128xf32>
    %32 = arith.andi %29, %31 : vector<8x128xi1>
    %33 = arith.ori %30, %32 : vector<8x128xi1>
    %34 = arith.cmpf ole, %5, %10 : vector<8x128xf32>
    %35 = arith.andi %33, %34 : vector<8x128xi1>
    %36 = arith.extui %35 : vector<8x128xi1> to vector<8x128xi32>
    %37 = arith.sitofp %36 : vector<8x128xi32> to vector<8x128xf32>
    %c0_17 = arith.constant 0 : index
    %c0_18 = arith.constant 0 : index
    %38 = vector.load %arg7[%c0_17, %c0_18] : memref<128x128xf32, #tpu.memory_space<vmem>>, vector<128x128xf32>
    %cst_19 = arith.constant dense<0.000000e+00> : vector<8x128xf32>
    %39 = tpu.matmul %37, %38, %cst_19 {dimension_numbers = #tpu.dot_dimension_numbers<[1], [0], [0], [1], [0, 0, 1, 1], [], []>} : vector<8x128xf32>, vector<128x128xf32>, vector<8x128xf32> -> vector<8x128xf32>
    %c0_20 = arith.constant 0 : index
    %c0_21 = arith.constant 0 : index
    %40 = vector.load %arg8[%c0_20, %c0_21] : memref<8x128xf32, #tpu.memory_space<vmem>>, vector<8x128xf32>
    tpu.vector_store %arg8[%c0_20, %c0_21], %39 {strides = array<i32>} : memref<8x128xf32, #tpu.memory_space<vmem>>, vector<8x128xf32>,
    return
  }
  func.func @transform_0(%arg0: i32) -> (i32, i32) {
    %c0_i32 = arith.constant 0 : i32
    %c0_i32_0 = arith.constant 0 : i32
    return %arg0, %c0_i32 : i32, i32
  }
  func.func @transform_1(%arg0: i32) -> (i32, i32) {
    %c0_i32 = arith.constant 0 : i32
    %c0_i32_0 = arith.constant 0 : i32
    return %arg0, %c0_i32 : i32, i32
  }
  func.func @transform_2(%arg0: i32) -> (i32, i32) {
    %c0_i32 = arith.constant 0 : i32
    %c0_i32_0 = arith.constant 0 : i32
    %c0_i32_1 = arith.constant 0 : i32
    return %c0_i32, %c0_i32_0 : i32, i32
  }
  func.func @transform_3(%arg0: i32) -> (i32, i32) {
    %c0_i32 = arith.constant 0 : i32
    %c0_i32_0 = arith.constant 0 : i32
    %c0_i32_1 = arith.constant 0 : i32
    return %c0_i32, %c0_i32_0 : i32, i32
  }
  func.func @transform_4(%arg0: i32) -> (i32, i32) {
    %c0_i32 = arith.constant 0 : i32
    %c0_i32_0 = arith.constant 0 : i32
    %c0_i32_1 = arith.constant 0 : i32
    return %c0_i32, %c0_i32_0 : i32, i32
  }
  func.func @transform_5(%arg0: i32) -> (i32, i32) {
    %c0_i32 = arith.constant 0 : i32
    %c0_i32_0 = arith.constant 0 : i32
    %c0_i32_1 = arith.constant 0 : i32
    return %c0_i32, %c0_i32_0 : i32, i32
  }
  func.func @transform_6(%arg0: i32) -> (i32, i32) {
    %c0_i32 = arith.constant 0 : i32
    %c0_i32_0 = arith.constant 0 : i32
    %c0_i32_1 = arith.constant 0 : i32
    return %c0_i32, %c0_i32_0 : i32, i32
  }
  func.func @transform_7(%arg0: i32) -> (i32, i32) {
    %c0_i32 = arith.constant 0 : i32
    %c0_i32_0 = arith.constant 0 : i32
    return %arg0, %c0_i32 : i32, i32
  }
}

</mosaic_0001>

<bundles_post_ra>
// kernel: quantize.1
= control target key start
LH: loop header
LB: loop body
LE: loop exit
PB: predicated region body
PF: predicated region fallthrough
CT: control target
= control target key end

     0   :  { %v794_v0 = vmov 0.0|0.0   ;;  %vm795_vm0 = vmmov 0   ;;  %v796_v6 = vmov 0.0   ;;  %vm287_vm1 = vcmask 64512   ;;  %s1085_s2 = inlined_call_operand.vmem [shape: f32[128,128], index: 2, kind: input, shape index: {}]   ;;  %s1086_s3 = inlined_call_operand.vmem [shape: f32[128,128], index: 3, kind: input, shape index: {}]   ;;  %s1087_s4 = inlined_call_operand.vmem [shape: f32[128,128], index: 4, kind: input, shape index: {}]   ;;  %s1088_s0 = inlined_call_operand.vmem [shape: f32[8,128], index: 0, kind: input, shape index: {}]   ;;  %s1089_s5 = inlined_call_operand.vmem [shape: f32[8,128], index: 5, kind: input, shape index: {}]   ;;  %s1090_s1 = inlined_call_operand.vmem [shape: f32[8,8], index: 1, kind: input, shape index: {}]   ;;  %s1091_s6 = inlined_call_operand.vmem [shape: f32[128,128], index: 6, kind: input, shape index: {}]   ;;  %s1092_s7 = inlined_call_operand.vmem [shape: f32[8,128], index: 7, kind: output, shape index: {}]  }
   0x1   :  { %694 = vmatprep.subr.bf16.mxu0 %v794_v0  ;;  %v28_v1 = vld [vmem:[%s1085_s2] sm:$0xff]  ;;  %v29_v2 = vld [vmem:[%s1085_s2 + $0x8] sm:$0xff]  ;;  %v30_v3 = vld [vmem:[%s1085_s2 + $0x10] sm:$0xff]  ;;  %718 = vmatprep.subr.bf16.mxu1 %v794_v0 }
   0x2   :  { %v695_v4 = vpack.c.bf16 %v29_v2, %v28_v1  ;;  %v31_v5 = vld [vmem:[%s1085_s2 + $0x18] sm:$0xff]  ;;  %581 = vmatprep.mubr.msk.f32.mxu0 %vm795_vm0, %v796_v6  ;;  %616 = vmatprep.mubr.msk.f32.mxu1 %vm795_vm0, %v796_v6  ;;  %v32_v8 = vld [vmem:[%s1085_s2 + $0x20] sm:$0xff]  ;;  %v33_v9 = vld [vmem:[%s1085_s2 + $0x28] sm:$0xff] }
   0x3   :  { %v698_v7 = vpack.c.bf16 %v31_v5, %v30_v3  ;;  %v114_v10 = vld [vmem:[%s1086_s3] sm:$0xff]  ;;  %v115_v11 = vld [vmem:[%s1086_s3 + $0x8] sm:$0xff]  ;;  %v116_v13 = vld [vmem:[%s1086_s3 + $0x10] sm:$0xff]  ;;  %v701_v15 = vpack.c.bf16 %v33_v9, %v32_v8 }
   0x4   :  { %696 = vmatpush3.bf16.msra.mxu0 %v695_v4  ;;  %v719_v12 = vpack.c.bf16 %v115_v11, %v114_v10  ;;  %v117_v14 = vld [vmem:[%s1086_s3 + $0x18] sm:$0xff]  ;;  %v34_v16 = vld [vmem:[%s1085_s2 + $0x30] sm:$0xff]  ;;  %v118_v19 = vld [vmem:[%s1086_s3 + $0x20] sm:$0xff] }
   0x5   :  { %697 = vmatprep.subr.bf16.mxu0 %v794_v0  ;;  %v35_v17 = vld [vmem:[%s1085_s2 + $0x38] sm:$0xff]  ;;  %v722_v18 = vpack.c.bf16 %v117_v14, %v116_v13  ;;  %v119_v20 = vld [vmem:[%s1086_s3 + $0x28] sm:$0xff]  ;;  %v36_v22 = vld [vmem:[%s1085_s2 + $0x40] sm:$0xff] }
   0x6   :  { %720 = vmatpush3.bf16.msra.mxu1 %v719_v12  ;;  %v704_v21 = vpack.c.bf16 %v35_v17, %v34_v16  ;;  %v37_v23 = vld [vmem:[%s1085_s2 + $0x48] sm:$0xff]  ;;  %v725_v24 = vpack.c.bf16 %v119_v20, %v118_v19  ;;  %v120_v25 = vld [vmem:[%s1086_s3 + $0x30] sm:$0xff]  ;;  %v121_v26 = vld [vmem:[%s1086_s3 + $0x38] sm:$0xff] }
   0x7   :  { %721 = vmatprep.subr.bf16.mxu1 %v794_v0  ;;  %v707_v27 = vpack.c.bf16 %v37_v23, %v36_v22  ;;  %v38_v28 = vld [vmem:[%s1085_s2 + $0x50] sm:$0xff]  ;;  %v39_v29 = vld [vmem:[%s1085_s2 + $0x58] sm:$0xff]  ;;  %v728_v30 = vpack.c.bf16 %v121_v26, %v120_v25  ;;  %v122_v31 = vld [vmem:[%s1086_s3 + $0x40] sm:$0xff] }
   0x8   :  { %699 = vmatpush3.bf16.msra.mxu0 %v698_v7  ;;  %v123_v32 = vld [vmem:[%s1086_s3 + $0x48] sm:$0xff]  ;;  %v710_v33 = vpack.c.bf16 %v39_v29, %v38_v28  ;;  %v40_v34 = vld [vmem:[%s1085_s2 + $0x60] sm:$0xff]  ;;  %v124_v37 = vld [vmem:[%s1086_s3 + $0x50] sm:$0xff] }
   0x9   :  { %700 = vmatprep.subr.bf16.mxu0 %v794_v0  ;;  %v41_v35 = vld [vmem:[%s1085_s2 + $0x68] sm:$0xff]  ;;  %v731_v36 = vpack.c.bf16 %v123_v32, %v122_v31  ;;  %v125_v38 = vld [vmem:[%s1086_s3 + $0x58] sm:$0xff]  ;;  %v42_v40 = vld [vmem:[%s1085_s2 + $0x70] sm:$0xff] }
   0xa   :  { %723 = vmatpush3.bf16.msra.mxu1 %v722_v18  ;;  %v713_v39 = vpack.c.bf16 %v41_v35, %v40_v34  ;;  %v43_v41 = vld [vmem:[%s1085_s2 + $0x78] sm:$0xff]  ;;  %v734_v42 = vpack.c.bf16 %v125_v38, %v124_v37  ;;  %v126_v43 = vld [vmem:[%s1086_s3 + $0x60] sm:$0xff]  ;;  %v127_v44 = vld [vmem:[%s1086_s3 + $0x68] sm:$0xff] }
   0xb   :  { %724 = vmatprep.subr.bf16.mxu1 %v794_v0  ;;  %v716_v45 = vpack.c.bf16 %v43_v41, %v42_v40  ;;  %v200_v46 = vld [vmem:[%s1087_s4] sm:$0xff]  ;;  %v201_v47 = vld [vmem:[%s1087_s4 + $0x8] sm:$0xff]  ;;  %v737_v48 = vpack.c.bf16 %v127_v44, %v126_v43  ;;  %v128_v49 = vld [vmem:[%s1086_s3 + $0x70] sm:$0xff]  ;;  %v362_v44 = vlaneseq }
   0xc   :  { %702 = vmatpush3.bf16.msra.mxu0 %v701_v15  ;;  %v129_v50 = vld [vmem:[%s1086_s3 + $0x78] sm:$0xff]  ;;  %v26_v51 = vld [vmem:[%s1088_s0] sm:$0xff]  ;;  %v743_v52 = vpack.c.bf16 %v201_v47, %v200_v46  ;;  %v202_v53 = vld [vmem:[%s1087_s4 + $0x10] sm:$0xff] }
   0xd   :  { %703 = vmatprep.subr.bf16.mxu0 %v794_v0  ;;  %v203_v54 = vld [vmem:[%s1087_s4 + $0x18] sm:$0xff]  ;;  %v740_v55 = vpack.c.bf16 %v129_v50, %v128_v49  ;;  %v204_v57 = vld [vmem:[%s1087_s4 + $0x20] sm:$0xff]  ;;  %v205_v58 = vld [vmem:[%s1087_s4 + $0x28] sm:$0xff]  ;;  %v797_v49 = vmov 1.0  }
   0xe   :  { %726 = vmatpush3.bf16.msra.mxu1 %v725_v24  ;;  %v746_v56 = vpack.c.bf16 %v203_v54, %v202_v53  ;;  %v286_v59 = vld [vmem:[%s1089_s5] sm:$0xff]  ;;  %v749_v60 = vpack.c.bf16 %v205_v58, %v204_v57  ;;  %v206_v61 = vld [vmem:[%s1087_s4 + $0x30] sm:$0xff]  ;;  %v207_v62 = vld [vmem:[%s1087_s4 + $0x38] sm:$0xff] }
   0xf   :  { %727 = vmatprep.subr.bf16.mxu1 %v794_v0  ;;  %v27_v63 = vld [vmem:[%s1090_s1] sm:$0xff]  ;;  %v752_v1 = vpack.c.bf16 %v207_v62, %v206_v61  ;;  %v209_v3 = vld [vmem:[%s1087_s4 + $0x48] sm:$0xff]  ;;  %v210_v5 = vld [vmem:[%s1087_s4 + $0x50] sm:$0xff] }
  0x10   :  { %705 = vmatpush3.bf16.msra.mxu0 %v704_v21  ;;  %v208_v2 = vld [vmem:[%s1087_s4 + $0x40] sm:$0xff]  ;;  %v211_v7 = vld [vmem:[%s1087_s4 + $0x58] sm:$0xff]  ;;  %v213_v9 = vld [vmem:[%s1087_s4 + $0x68] sm:$0xff] }
  0x11   :  { %706 = vmatprep.subr.bf16.mxu0 %v794_v0  ;;  %v755_v4 = vpack.c.bf16 %v209_v3, %v208_v2  ;;  %v758_v8 = vpack.c.bf16 %v211_v7, %v210_v5  ;;  %v214_v11 = vld [vmem:[%s1087_s4 + $0x70] sm:$0xff]  ;;  %v215_v12 = vld [vmem:[%s1087_s4 + $0x78] sm:$0xff]  ;;  %v385_v14 = vld [vmem:[%s1091_s6] sm:$0xff] }
  0x12   :  { %729 = vmatpush3.bf16.msra.mxu1 %v728_v30  ;;  %v764_v13 = vpack.c.bf16 %v215_v12, %v214_v11  ;;  %v386_v15 = vld [vmem:[%s1091_s6 + $0x8] sm:$0xff]  ;;  %v387_v16 = vld [vmem:[%s1091_s6 + $0x10] sm:$0xff]  ;;  %v388_v18 = vld [vmem:[%s1091_s6 + $0x18] sm:$0xff] }
  0x13   :  { %730 = vmatprep.subr.bf16.mxu1 %v794_v0  ;;  %v767_v17 = vpack.c.bf16 %v386_v15, %v385_v14  ;;  %v770_v19 = vpack.c.bf16 %v388_v18, %v387_v16  ;;  %v389_v20 = vld [vmem:[%s1091_s6 + $0x20] sm:$0xff]  ;;  %v390_v21 = vld [vmem:[%s1091_s6 + $0x28] sm:$0xff]  ;;  %v391_v23 = vld [vmem:[%s1091_s6 + $0x30] sm:$0xff] }
  0x14   :  { %708 = vmatpush3.bf16.msra.mxu0 %v707_v27  ;;  %v773_v22 = vpack.c.bf16 %v390_v21, %v389_v20  ;;  %v392_v24 = vld [vmem:[%s1091_s6 + $0x38] sm:$0xff]  ;;  %v393_v26 = vld [vmem:[%s1091_s6 + $0x40] sm:$0xff]  ;;  %v394_v27 = vld [vmem:[%s1091_s6 + $0x48] sm:$0xff] }
  0x15   :  { %709 = vmatprep.subr.bf16.mxu0 %v794_v0  ;;  %v776_v25 = vpack.c.bf16 %v392_v24, %v391_v23  ;;  %v779_v28 = vpack.c.bf16 %v394_v27, %v393_v26  ;;  %v395_v29 = vld [vmem:[%s1091_s6 + $0x50] sm:$0xff]  ;;  %v396_v30 = vld [vmem:[%s1091_s6 + $0x58] sm:$0xff]  ;;  %v397_v32 = vld [vmem:[%s1091_s6 + $0x60] sm:$0xff] }
  0x16   :  { %732 = vmatpush3.bf16.msra.mxu1 %v731_v36  ;;  %v782_v31 = vpack.c.bf16 %v396_v30, %v395_v29  ;;  %v399_v35 = vld [vmem:[%s1091_s6 + $0x70] sm:$0xff]  ;;  %v400_v36 = vld [vmem:[%s1091_s6 + $0x78] sm:$0xff] }
  0x17   :  { %733 = vmatprep.subr.bf16.mxu1 %v794_v0  ;;  %v788_v37 = vpack.c.bf16 %v400_v36, %v399_v35 }
  0x18   :  { %711 = vmatpush3.bf16.msra.mxu0 %v710_v33  ;;  %v398_v33 = vld [vmem:[%s1091_s6 + $0x68] sm:$0xff] }
  0x19   :  { %712 = vmatprep.subr.bf16.mxu0 %v794_v0  ;;  %v785_v34 = vpack.c.bf16 %v398_v33, %v397_v32 }
  0x1a   :  { %735 = vmatpush3.bf16.msra.mxu1 %v734_v42 }
  0x1b   :  { %736 = vmatprep.subr.bf16.mxu1 %v794_v0 }
  0x1c   :  { %714 = vmatpush3.bf16.msra.mxu0 %v713_v39 }
  0x1d   :  { %715 = vmatprep.subr.bf16.mxu0 %v794_v0 }
  0x1e   :  { %738 = vmatpush3.bf16.msra.mxu1 %v737_v48 }
  0x1f   :  { %739 = vmatprep.subr.bf16.mxu1 %v794_v0 }
  0x20   :  { %717 = vmatpush3.bf16.msra.mxu0 %v716_v45  ;;  %v363_v45 = vand.u32 127, %v362_v44 }
  0x21   :  { %742 = vmatprep.subr.bf16.mxu0 %v794_v0 }
  0x22   :  { %741 = vmatpush3.bf16.msra.mxu1 %v740_v55  ;;  %v368_v46 = vand.u32 15, %v363_v45 }
  0x23   :  { %582 = vmatmul.mubr.f32.vlgmr.msra.gmra.mrb[0].mxu0 %v26_v51  ;;  %654 = vmatprep.subr.mxu1 %v796_v6 }
  0x24   :  { %744 = vmatpush3.bf16.msra.mxu0 %v743_v52  ;;  %651 = vmatprep.mubr.msk.f32.mxu0 %vm795_vm0, %v796_v6  ;;  %vm376_vm2 = vcmp.eq.s32.totalorder %v368_v46, 15 }
  0x25   :  { %745 = vmatprep.subr.bf16.mxu0 %v794_v0  ;;  %617 = vmatmul.mubr.f32.vlgmr.msra.gmra.mrb[0].mxu1 %v26_v51 }
  0x26   :  { %655 = vmatpush3.msra.mxu1 %v286_v59  ;;  %656 = vmatprep.mubr.msk.f32.mxu1 %vm795_vm0, %v796_v6 }
  0x27   :  { %766 = vmatprep.subr.bf16.mxu1 %v794_v0 }
  0x28   :  { %747 = vmatpush3.bf16.msra.mxu0 %v746_v56 }
  0x29   :  { %748 = vmatprep.subr.bf16.mxu0 %v794_v0  ;;  %657 = vmatmul.mubr.msk.f32.vlgmr.msra.gmra.mrb[2].mxu1 %vm287_vm1, %v27_v63 }
  0x2a   :  { %691 = vmatprep.mubr.msk.f32.mxu1 %vm795_vm0, %v796_v6  ;;  %v212_v6 = vld [vmem:[%s1087_s4 + $0x60] sm:$0xff]  ;;  %768 = vmatpush3.bf16.msra.mxu1 %v767_v17 }
  0x2b   :  { %v761_v10 = vpack.c.bf16 %v213_v9, %v212_v6  ;;  %769 = vmatprep.subr.bf16.mxu1 %v794_v0 }
  0x2c   :  { %750 = vmatpush3.bf16.msra.mxu0 %v749_v60 }
  0x2d   :  { %751 = vmatprep.subr.bf16.mxu0 %v794_v0 }
  0x2e   :  { %771 = vmatpush3.bf16.msra.mxu1 %v770_v19 }
  0x2f   :  { %772 = vmatprep.subr.bf16.mxu1 %v794_v0 }
  0x30   :  { %753 = vmatpush3.bf16.msra.mxu0 %v752_v1 }
  0x31   :  { %754 = vmatprep.subr.bf16.mxu0 %v794_v0 }
  0x32   :  { %774 = vmatpush3.bf16.msra.mxu1 %v773_v22 }
  0x33   :  { %775 = vmatprep.subr.bf16.mxu1 %v794_v0 }
  0x34   :  { %756 = vmatpush3.bf16.msra.mxu0 %v755_v4 }
  0x35   :  { %757 = vmatprep.subr.bf16.mxu0 %v794_v0 }
  0x36   :  { %777 = vmatpush3.bf16.msra.mxu1 %v776_v25 }
  0x37   :  { %778 = vmatprep.subr.bf16.mxu1 %v794_v0 }
  0x38   :  { %759 = vmatpush3.bf16.msra.mxu0 %v758_v8 }
  0x39   :  { %760 = vmatprep.subr.bf16.mxu0 %v794_v0 }
  0x3a   :  { %780 = vmatpush3.bf16.msra.mxu1 %v779_v28 }
  0x3b   :  { %781 = vmatprep.subr.bf16.mxu1 %v794_v0 }
  0x3c   :  { %762 = vmatpush3.bf16.msra.mxu0 %v761_v10 }
  0x3d   :  { %763 = vmatprep.subr.bf16.mxu0 %v794_v0 }
  0x3e   :  { %783 = vmatpush3.bf16.msra.mxu1 %v782_v31 }
  0x3f   :  { %784 = vmatprep.subr.bf16.mxu1 %v794_v0 }
  0x40   :  { %765 = vmatpush3.bf16.msra.mxu0 %v764_v13 }
  0x42   :  { %786 = vmatpush3.bf16.msra.mxu1 %v785_v34 }
  0x43   :  { %652 = vmatmul.mubr.f32.vlgmr.msra.gmra.mrb[2].mxu0 %v26_v51  ;;  %787 = vmatprep.subr.bf16.mxu1 %v794_v0 }
  0x46   :  { %789 = vmatpush3.bf16.msra.mxu1 %v788_v37 }
  0xf6   :  { %v110_v38 = vpop.f32.mrb[0].mxu0 }
  0xf7   :  { %v583_v39 = vpop.f32.mrb[1].mxu0 }
  0xf8   :  { %v196_v40 = vpop.f32.mrb[0].mxu1 }
  0xf9   :  { %v618_v41 = vpop.f32.mrb[1].mxu1 }
  0xfc   :  { %v357_v42 = vpop.f32.mrb[2].mxu1 }
  0xfd   :  { %v658_v43 = vpop.f32.mrb[3].mxu1 }
 0x116   :  { %v282_v0 = vpop.f32.mrb[2].mxu0 }
 0x117   :  { %v361_v47 = vmul.f32 %v357_v42, %v282_v0  ;;  %v653_v48 = vpop.f32.mrb[3].mxu0 }
 0x119   :  { %vm377_vm3 = vcmp.gt.f32.partialorder %v110_v38, %v361_v47  ;;  %vm378_vm4 = vcmp.ge.f32.partialorder %v110_v38, %v361_v47  ;;  %vm381_vm5 = vcmp.le.f32.partialorder %v196_v40, %v361_v47 }
 0x11a   :  { %vm379_vm6 = vmand %vm376_vm2, %vm378_vm4 }
 0x11b   :  { %vm380_vm7 = vmor %vm377_vm3, %vm379_vm6 }
 0x11c   :  { %vm382_vm8 = vmand %vm380_vm7, %vm381_vm5 }
 0x11d   :  { %692 = vmatmul.mubr.msk.f32.vlgmr.msra.gmra.mrb[4].mxu1 %vm382_vm8, %v797_v49 }
 0x1f0   :  { %v467_v50 = vpop.f32.mrb[4].mxu1 }
 0x1f1   :  { %471 = vst [vmem:[%s1092_s7] sm:$0xff] %v467_v50  ;;  %v693_v51 = vpop.f32.mrb[5].mxu1 }

</bundles_post_ra>
